<compile_context>
chip_gen: v7x
topology: tpu7x:2x2x1
jax: 0.10.0
libtpu: 0.0.40
codegen_flags: <defaults>
</compile_context>

<pallas_src>
import jax
import jax.numpy as jnp
from jax.experimental import pallas as pl
from jax.experimental.pallas import tpu as pltpu


def convmodule_kernel(x_ref, w1_ref, b1_ref, w2_ref, b2_ref, wf_ref, bf_ref, o_ref):
    x = x_ref[...]                                               # (TN, 4) batch-in-sublanes
    # conv1 (1->32, k=3, pad=1) at all 4 output positions, stacked to 128 channels + ReLU.
    t1 = jnp.maximum(
        jnp.dot(x, w1_ref[...], preferred_element_type=jnp.float32) + b1_ref[...],
        0.0)                                                     # (TN, 128)
    # avg_pool1d(2) + conv2 (32->64, k=2, pad=1, positions t=0,1) + ReLU,
    # pooling folded into the precomputed weight W2e.
    t2 = jnp.maximum(
        jnp.dot(t1, w2_ref[...], preferred_element_type=jnp.float32) + b2_ref[...],
        0.0)                                                     # (TN, 128)
    # avg_pool1d(2) + fc1 + fc2, all folded into a single (128 -> 1) matvec.
    o_ref[...] = (jnp.dot(t2, wf_ref[...], preferred_element_type=jnp.float32)
                  + bf_ref[...])                                 # (TN, 1)


def _prep_weights(params):
    """Exact algebraic fusions -> three matmul weights (all tiny, VMEM-resident)."""
    w1, b1, w2, b2, wf1, bf1, wf2, bf2 = params
    f32 = jnp.float32

    # ---- conv1 stacked over the 4 output positions (pad taps dropped -> zeros) ----
    w1m = w1[:, 0, :].astype(f32)                              # (32, 3) taps k0,k1,k2
    z1 = jnp.zeros((32, 1), f32)
    W1s = jnp.concatenate([                                    # (128, 4); cols = x[0..3]
        jnp.concatenate([w1m[:, 1:2], w1m[:, 2:3], z1, z1], axis=1),           # t=0
        jnp.concatenate([w1m[:, 0:1], w1m[:, 1:2], w1m[:, 2:3], z1], axis=1),  # t=1
        jnp.concatenate([z1, w1m[:, 0:1], w1m[:, 1:2], w1m[:, 2:3]], axis=1),  # t=2
        jnp.concatenate([z1, z1, w1m[:, 0:1], w1m[:, 1:2]], axis=1),           # t=3
    ], axis=0)
    b1s = jnp.tile(b1.astype(f32), 4)                          # (128,)

    # ---- avg_pool1 folded into conv2:  [a; b] = P @ t1 ----
    I32 = jnp.eye(32, dtype=f32)
    Z32 = jnp.zeros((32, 32), f32)
    P = 0.5 * jnp.concatenate([
        jnp.concatenate([I32, I32, Z32, Z32], axis=1),
        jnp.concatenate([Z32, Z32, I32, I32], axis=1)], axis=0)  # (64, 128)
    w2k0 = w2[:, :, 0].astype(f32)                              # (64, 32)
    w2k1 = w2[:, :, 1].astype(f32)
    Z64 = jnp.zeros((64, 32), f32)
    W2s = jnp.concatenate([                                     # (128, 64)
        jnp.concatenate([w2k1, Z64], axis=1),                   # conv2 t=0 (left pad)
        jnp.concatenate([w2k0, w2k1], axis=1)], axis=0)         # conv2 t=1
    W2e = W2s @ P                                               # (128, 128)
    b2s = jnp.concatenate([b2, b2]).astype(f32)                 # (128,)

    # ---- avg_pool2 + fc1 + fc2 folded offline (no activation between the linears) ----
    wfc = (wf2 @ wf1).astype(f32)                               # (1, 64)
    bfc = (wf2 @ bf1 + bf2).astype(f32)                         # (1,)
    wff = 0.5 * jnp.concatenate([wfc, wfc], axis=1)             # (1, 128)

    # Transposed for the batch-in-sublanes (row-vector) formulation.
    return (W1s.T, b1s.reshape(1, 128),
            W2e.T, b2s.reshape(1, 128),
            wff.T, bfc.reshape(1, 1))


def convmodule_forward(x, params, *, tile_n=8192):
    """x: (N, 1, 4) float32 (PyTorch NCL). Returns (N, 1) float32.

    tile_n=8192 keeps per-step VMEM well under the 32 MiB scoped cap on all of
    v5e/v6e/v7x; it can be raised toward 16384 on v5e/v6e if desired.
    """
    N, cin, L = x.shape
    assert cin == 1 and L == 4, "module structure requires in_channels=1 and L=4"
    w1t, b1r, w2t, b2r, wft, bfr = _prep_weights(params)

    x2 = x[:, 0, :]                     # (N, 4) — contiguous slice, no HBM round trip

    if N <= tile_n:
        # Single block: block dims equal the full array dims, so no padding and no
        # (8,128)-divisibility constraint; also no per-step grid overhead.
        blk_n, num_tiles, n_pad = N, 1, N
        xin = x2
    else:
        num_tiles = pl.cdiv(N, tile_n)
        blk_n = pl.cdiv(pl.cdiv(N, num_tiles), 8) * 8           # balanced, 8-aligned
        n_pad = num_tiles * blk_n
        xin = jnp.pad(x2, ((0, n_pad - N), (0, 0)))

    def const(shape):
        return pl.BlockSpec(shape, lambda i: (0, 0))            # VMEM-resident weights

    out = pl.pallas_call(
        convmodule_kernel,
        out_shape=jax.ShapeDtypeStruct((n_pad, 1), jnp.float32),
        grid=(num_tiles,),
        in_specs=[
            pl.BlockSpec((blk_n, 4), lambda i: (i, 0)),         # x streamed over batch
            const((4, 128)),                                    # W1s.T
            const((1, 128)),                                    # b1s
            const((128, 128)),                                  # W2e.T (pool1 folded in)
            const((1, 128)),                                    # b2s
            const((128, 1)),                                    # wff.T (pool2+fc folded)
            const((1, 1)),                                      # bfc
        ],
        out_specs=pl.BlockSpec((blk_n, 1), lambda i: (i, 0)),
        compiler_params=pltpu.CompilerParams(
            dimension_semantics=("parallel",),
            vmem_limit_bytes=32 * 1024 * 1024),
    )(xin, w1t, b1r, w2t, b2r, wft, bfr)

    # padded batch rows carry bias-driven garbage — must slice before any reduction
    return out[:N]


def init_params(key):
    """Deterministic synthetic parameters with PyTorch-default-ish uniform ranges."""
    ks = jax.random.split(key, 8)

    def u(k, shape, fan_in):
        s = 1.0 / (fan_in ** 0.5)
        return jax.random.uniform(k, shape, jnp.float32, -s, s)

    w1 = u(ks[0], (32, 1, 3), 3)       # Conv1d(1, 32, k=3)
    b1 = u(ks[1], (32,), 3)
    w2 = u(ks[2], (64, 32, 2), 64)     # Conv1d(32, 64, k=2)
    b2 = u(ks[3], (64,), 64)
    wf1 = u(ks[4], (32, 64), 64)       # Linear(64, 32)
    bf1 = u(ks[5], (32,), 64)
    wf2 = u(ks[6], (1, 32), 32)        # Linear(32, 1)
    bf2 = u(ks[7], (1,), 32)
    return (w1, b1, w2, b2, wf1, bf1, wf2, bf2)


def reference_forward(x, params):
    """Pure-JAX replica of the PyTorch forward, for correctness checking."""
    w1, b1, w2, b2, wf1, bf1, wf2, bf2 = params
    dn = ("NCH", "OIH", "NCH")
    o = jax.lax.conv_general_dilated(x, w1, (1,), [(1, 1)], dimension_numbers=dn)
    o = jax.nn.relu(o + b1[None, :, None])
    N, C, L = o.shape
    o = o[:, :, :(L // 2) * 2].reshape(N, C, L // 2, 2).mean(-1)    # avg_pool1d(2)
    o = jax.lax.conv_general_dilated(o, w2, (1,), [(1, 1)], dimension_numbers=dn)
    o = jax.nn.relu(o + b2[None, :, None])
    N, C, L = o.shape
    o = o[:, :, :(L // 2) * 2].reshape(N, C, L // 2, 2).mean(-1)    # avg_pool1d(2)
    o = o[:, :, 0]                       # squeeze spatial dim only (robust for N==1)
    o = o @ wf1.T + bf1
    o = o @ wf2.T + bf2
    return o


if __name__ == "__main__":
    key = jax.random.PRNGKey(0)
    kx, kx2, kp = jax.random.split(key, 3)
    params = init_params(kp)

    # small shape consistent with the module (final pooled length must be 1 => L=4)
    N, L = 2, 4
    x = jax.random.normal(kx, (N, 1, L), jnp.float32)
    out = jax.block_until_ready(convmodule_forward(x, params))
    ref = reference_forward(x, params)
    assert out.shape == (N, 1), out.shape
    assert jnp.allclose(out, ref, atol=1e-5, rtol=1e-4), (out, ref)

    # exercise the batch grid (multiple tiles + ragged tail handled by padding)
    N2 = 300
    x2 = jax.random.normal(kx2, (N2, 1, L), jnp.float32)
    out2 = jax.block_until_ready(convmodule_forward(x2, params, tile_n=128))
    ref2 = reference_forward(x2, params)
    assert out2.shape == (N2, 1), out2.shape
    assert jnp.allclose(out2, ref2, atol=1e-5, rtol=1e-4), (out2, ref2)

    print("KERNEL_OK")
</pallas_src>

<mosaic_0001>
module attributes {stable_mosaic.version = 11 : i64} {
  func.func @convmodule_kernel(%arg0: i32, %arg1: memref<2x4xf32, #tpu.memory_space<vmem>>, %arg2: memref<4x128xf32, #tpu.memory_space<vmem>>, %arg3: memref<1x128xf32, #tpu.memory_space<vmem>>, %arg4: memref<128x128xf32, #tpu.memory_space<vmem>>, %arg5: memref<1x128xf32, #tpu.memory_space<vmem>>, %arg6: memref<128x1xf32, #tpu.memory_space<vmem>>, %arg7: memref<1x1xf32, #tpu.memory_space<vmem>>, %arg8: memref<2x1xf32, #tpu.memory_space<vmem>>) attributes {dimension_semantics = [#tpu.dimension_semantics<parallel>], iteration_bounds = array<i64: 1>, scalar_prefetch = 0 : i64, scratch_operands = 0 : i64, tpu.core_type = #tpu.core_type<tc>, window_params = [{transform_indices = @transform_0, window_bounds = array<i64: 2, 4>}, {pipeline_mode = #tpu.pipeline_mode<synchronous>, transform_indices = @transform_1, window_bounds = array<i64: 4, 128>}, {pipeline_mode = #tpu.pipeline_mode<synchronous>, transform_indices = @transform_2, window_bounds = array<i64: 1, 128>}, {pipeline_mode = #tpu.pipeline_mode<synchronous>, transform_indices = @transform_3, window_bounds = array<i64: 128, 128>}, {pipeline_mode = #tpu.pipeline_mode<synchronous>, transform_indices = @transform_4, window_bounds = array<i64: 1, 128>}, {pipeline_mode = #tpu.pipeline_mode<synchronous>, transform_indices = @transform_5, window_bounds = array<i64: 128, 1>}, {pipeline_mode = #tpu.pipeline_mode<synchronous>, transform_indices = @transform_6, window_bounds = array<i64: 1, 1>}, {transform_indices = @transform_7, window_bounds = array<i64: 2, 1>}]} {
    %c0 = arith.constant 0 : index
    %c0_0 = arith.constant 0 : index
    %0 = vector.load %arg1[%c0, %c0_0] : memref<2x4xf32, #tpu.memory_space<vmem>>, vector<2x4xf32>
    %c0_1 = arith.constant 0 : index
    %c0_2 = arith.constant 0 : index
    %1 = vector.load %arg2[%c0_1, %c0_2] : memref<4x128xf32, #tpu.memory_space<vmem>>, vector<4x128xf32>
    %cst = arith.constant dense<0.000000e+00> : vector<2x128xf32>
    %2 = tpu.matmul %0, %1, %cst {dimension_numbers = #tpu.dot_dimension_numbers<[1], [0], [0], [1], [0, 0, 1, 1], [], []>} : vector<2x4xf32>, vector<4x128xf32>, vector<2x128xf32> -> vector<2x128xf32>
    %c0_3 = arith.constant 0 : index
    %c0_4 = arith.constant 0 : index
    %3 = vector.load %arg3[%c0_3, %c0_4] : memref<1x128xf32, #tpu.memory_space<vmem>>, vector<1x128xf32>
    %4 = vector.broadcast %3 : vector<1x128xf32> to vector<2x128xf32>
    %5 = arith.addf %2, %4 : vector<2x128xf32>
    %cst_5 = arith.constant 0.000000e+00 : f32
    %6 = vector.broadcast %cst_5 : f32 to vector<2x128xf32>
    %7 = arith.maximumf %5, %6 : vector<2x128xf32>
    %c0_6 = arith.constant 0 : index
    %c0_7 = arith.constant 0 : index
    %8 = vector.load %arg4[%c0_6, %c0_7] : memref<128x128xf32, #tpu.memory_space<vmem>>, vector<128x128xf32>
    %cst_8 = arith.constant dense<0.000000e+00> : vector<2x128xf32>
    %9 = tpu.matmul %7, %8, %cst_8 {dimension_numbers = #tpu.dot_dimension_numbers<[1], [0], [0], [1], [0, 0, 1, 1], [], []>} : vector<2x128xf32>, vector<128x128xf32>, vector<2x128xf32> -> vector<2x128xf32>
    %c0_9 = arith.constant 0 : index
    %c0_10 = arith.constant 0 : index
    %10 = vector.load %arg5[%c0_9, %c0_10] : memref<1x128xf32, #tpu.memory_space<vmem>>, vector<1x128xf32>
    %11 = vector.broadcast %10 : vector<1x128xf32> to vector<2x128xf32>
    %12 = arith.addf %9, %11 : vector<2x128xf32>
    %cst_11 = arith.constant 0.000000e+00 : f32
    %13 = vector.broadcast %cst_11 : f32 to vector<2x128xf32>
    %14 = arith.maximumf %12, %13 : vector<2x128xf32>
    %c0_12 = arith.constant 0 : index
    %c0_13 = arith.constant 0 : index
    %15 = vector.load %arg6[%c0_12, %c0_13] : memref<128x1xf32, #tpu.memory_space<vmem>>, vector<128x1xf32>
    %cst_14 = arith.constant dense<0.000000e+00> : vector<2x1xf32>
    %16 = tpu.matmul %14, %15, %cst_14 {dimension_numbers = #tpu.dot_dimension_numbers<[1], [0], [0], [1], [0, 0, 1, 1], [], []>} : vector<2x128xf32>, vector<128x1xf32>, vector<2x1xf32> -> vector<2x1xf32>
    %c0_15 = arith.constant 0 : index
    %c0_16 = arith.constant 0 : index
    %17 = vector.load %arg7[%c0_15, %c0_16] : memref<1x1xf32, #tpu.memory_space<vmem>>, vector<1x1xf32>
    %18 = vector.broadcast %17 : vector<1x1xf32> to vector<2x1xf32>
    %19 = arith.addf %16, %18 : vector<2x1xf32>
    %c0_17 = arith.constant 0 : index
    %c0_18 = arith.constant 0 : index
    %20 = vector.load %arg8[%c0_17, %c0_18] : memref<2x1xf32, #tpu.memory_space<vmem>>, vector<2x1xf32>
    tpu.vector_store %arg8[%c0_17, %c0_18], %19 {strides = array<i32>} : memref<2x1xf32, #tpu.memory_space<vmem>>, vector<2x1xf32>,
    return
  }
  func.func @transform_0(%arg0: i32) -> (i32, i32) {
    %c0_i32 = arith.constant 0 : i32
    %c0_i32_0 = arith.constant 0 : i32
    return %arg0, %c0_i32 : i32, i32
  }
  func.func @transform_1(%arg0: i32) -> (i32, i32) {
    %c0_i32 = arith.constant 0 : i32
    %c0_i32_0 = arith.constant 0 : i32
    %c0_i32_1 = arith.constant 0 : i32
    return %c0_i32, %c0_i32_0 : i32, i32
  }
  func.func @transform_2(%arg0: i32) -> (i32, i32) {
    %c0_i32 = arith.constant 0 : i32
    %c0_i32_0 = arith.constant 0 : i32
    %c0_i32_1 = arith.constant 0 : i32
    return %c0_i32, %c0_i32_0 : i32, i32
  }
  func.func @transform_3(%arg0: i32) -> (i32, i32) {
    %c0_i32 = arith.constant 0 : i32
    %c0_i32_0 = arith.constant 0 : i32
    %c0_i32_1 = arith.constant 0 : i32
    return %c0_i32, %c0_i32_0 : i32, i32
  }
  func.func @transform_4(%arg0: i32) -> (i32, i32) {
    %c0_i32 = arith.constant 0 : i32
    %c0_i32_0 = arith.constant 0 : i32
    %c0_i32_1 = arith.constant 0 : i32
    return %c0_i32, %c0_i32_0 : i32, i32
  }
  func.func @transform_5(%arg0: i32) -> (i32, i32) {
    %c0_i32 = arith.constant 0 : i32
    %c0_i32_0 = arith.constant 0 : i32
    %c0_i32_1 = arith.constant 0 : i32
    return %c0_i32, %c0_i32_0 : i32, i32
  }
  func.func @transform_6(%arg0: i32) -> (i32, i32) {
    %c0_i32 = arith.constant 0 : i32
    %c0_i32_0 = arith.constant 0 : i32
    %c0_i32_1 = arith.constant 0 : i32
    return %c0_i32, %c0_i32_0 : i32, i32
  }
  func.func @transform_7(%arg0: i32) -> (i32, i32) {
    %c0_i32 = arith.constant 0 : i32
    %c0_i32_0 = arith.constant 0 : i32
    return %arg0, %c0_i32 : i32, i32
  }
}

</mosaic_0001>

<bundles_post_ra>
// kernel: tpu_custom_call.1
= control target key start
LH: loop header
LB: loop body
LE: loop exit
PB: predicated region body
PF: predicated region fallthrough
CT: control target
= control target key end

     0   :  { %vm41_vm0 = vcmask 1043456   ;;  %vm37_vm1 = vcmask 31744   ;;  %v476_v0 = vmov 0.0   ;;  %vm477_vm2 = vmmov 0   ;;  %s649_s1 = inlined_call_operand.vmem [shape: f32[4,128], index: 1, kind: input, shape index: {}]   ;;  %s650_s0 = inlined_call_operand.vmem [shape: f32[2,4], index: 0, kind: input, shape index: {}]   ;;  %s651_s3 = inlined_call_operand.vmem [shape: f32[128,128], index: 3, kind: input, shape index: {}]   ;;  %s652_s5 = inlined_call_operand.vmem [shape: f32[128,1], index: 5, kind: input, shape index: {}]   ;;  %s653_s2 = inlined_call_operand.vmem [shape: f32[1,128], index: 2, kind: input, shape index: {}]   ;;  %s654_s6 = inlined_call_operand.<no memory space> [shape: f32[1,1], index: 6, kind: input, shape index: {}]   ;;  %s655_s4 = inlined_call_operand.vmem [shape: f32[1,128], index: 4, kind: input, shape index: {}]   ;;  %s656_s7 = inlined_call_operand.vmem [shape: f32[2,1], index: 7, kind: output, shape index: {}]  }
   0x1   :  { %350 = vmatprep.subr.mxu0 %v476_v0  ;;  %v29_v1 = vld [vmem:[%s649_s1] sm:$0xf]  ;;  %352 = vmatprep.mubr.msk.f32.mxu0 %vm477_vm2, %v476_v0  ;;  %v478_v4 = vmov 0.0|0.0   ;;  %v117_v5 = vld [vmem:[%s651_s3 + $0x8] sm:$0xff]  ;;  %v118_v6 = vld [vmem:[%s651_s3 + $0x10] sm:$0xff]  ;;  %v12_v57 = vstv %s654_s6  ;;  %vm303_vm3 = vcmask 1024  }
   0x2   :  { %v28_v2 = vld [vmem:[%s650_s0] sm:$0x3]  ;;  %351 = vmatpush3.msk.msra.mxu0 %vm41_vm0, %v29_v1  ;;  %425 = vmatprep.subr.bf16.mxu1 %v478_v4  ;;  %v119_v7 = vld [vmem:[%s651_s3 + $0x18] sm:$0xff]  ;;  %v121_v11 = vld [vmem:[%s651_s3 + $0x28] sm:$0xff]  ;;  %13 = vst [vmem:[#allocation2] sm:$0x1] %v12_v57 }
   0x3   :  { %v116_v3 = vld [vmem:[%s651_s3] sm:$0xff]  ;;  %353 = vmatmul.mubr.msk.f32.vlgmr.msra.gmra.mrb[0].mxu0 %vm37_vm1, %v28_v2  ;;  %387 = vmatprep.mubr.msk.f32.mxu1 %vm477_vm2, %v476_v0  ;;  %v429_v9 = vpack.c.bf16 %v119_v7, %v118_v6  ;;  %v122_v13 = vld [vmem:[%s651_s3 + $0x30] sm:$0xff]  ;;  %v123_v14 = vld [vmem:[%s651_s3 + $0x38] sm:$0xff] }
   0x4   :  { %v426_v8 = vpack.c.bf16 %v117_v5, %v116_v3  ;;  %449 = vmatprep.subr.bf16.mxu0 %v478_v4  ;;  %422 = vmatprep.mubr.msk.f32.mxu0 %vm477_vm2, %v476_v0  ;;  %v120_v10 = vld [vmem:[%s651_s3 + $0x20] sm:$0xff]  ;;  %v435_v15 = vpack.c.bf16 %v123_v14, %v122_v13  ;;  %v125_v17 = vld [vmem:[%s651_s3 + $0x48] sm:$0xff]  ;;  %v126_v19 = vld [vmem:[%s651_s3 + $0x50] sm:$0xff] }
   0x5   :  { %v432_v12 = vpack.c.bf16 %v121_v11, %v120_v10  ;;  %v124_v16 = vld [vmem:[%s651_s3 + $0x40] sm:$0xff]  ;;  %v127_v20 = vld [vmem:[%s651_s3 + $0x58] sm:$0xff]  ;;  %v129_v23 = vld [vmem:[%s651_s3 + $0x68] sm:$0xff] }
   0x6   :  { %427 = vmatpush3.bf16.msra.mxu1 %v426_v8  ;;  %v438_v18 = vpack.c.bf16 %v125_v17, %v124_v16  ;;  %v441_v21 = vpack.c.bf16 %v127_v20, %v126_v19  ;;  %v128_v22 = vld [vmem:[%s651_s3 + $0x60] sm:$0xff]  ;;  %v130_v25 = vld [vmem:[%s651_s3 + $0x70] sm:$0xff]  ;;  %v131_v26 = vld [vmem:[%s651_s3 + $0x78] sm:$0xff] }
   0x7   :  { %428 = vmatprep.subr.bf16.mxu1 %v478_v4  ;;  %v444_v24 = vpack.c.bf16 %v129_v23, %v128_v22  ;;  %v447_v27 = vpack.c.bf16 %v131_v26, %v130_v25  ;;  %v210_v28 = vld [vmem:[%s652_s5] sm:$0xff]  ;;  %v211_v29 = vld [vmem:[%s652_s5 + $0x8] sm:$0xff]  ;;  %v212_v30 = vld [vmem:[%s652_s5 + $0x10] sm:$0xff] }
   0x8   :  { %v450_v31 = vpack.c.bf16 %v211_v29, %v210_v28  ;;  %v213_v32 = vld [vmem:[%s652_s5 + $0x18] sm:$0xff]  ;;  %v214_v34 = vld [vmem:[%s652_s5 + $0x20] sm:$0xff]  ;;  %v215_v35 = vld [vmem:[%s652_s5 + $0x28] sm:$0xff] }
   0x9   :  { %v453_v33 = vpack.c.bf16 %v213_v32, %v212_v30  ;;  %v456_v36 = vpack.c.bf16 %v215_v35, %v214_v34  ;;  %v216_v37 = vld [vmem:[%s652_s5 + $0x30] sm:$0xff]  ;;  %v217_v38 = vld [vmem:[%s652_s5 + $0x38] sm:$0xff]  ;;  %v218_v40 = vld [vmem:[%s652_s5 + $0x40] sm:$0xff] }
   0xa   :  { %430 = vmatpush3.bf16.msra.mxu1 %v429_v9  ;;  %451 = vmatpush3.bf16.msra.mxu0 %v450_v31  ;;  %v459_v39 = vpack.c.bf16 %v217_v38, %v216_v37  ;;  %v219_v41 = vld [vmem:[%s652_s5 + $0x48] sm:$0xff]  ;;  %v220_v43 = vld [vmem:[%s652_s5 + $0x50] sm:$0xff]  ;;  %v221_v44 = vld [vmem:[%s652_s5 + $0x58] sm:$0xff] }
   0xb   :  { %431 = vmatprep.subr.bf16.mxu1 %v478_v4  ;;  %452 = vmatprep.subr.bf16.mxu0 %v478_v4  ;;  %v462_v42 = vpack.c.bf16 %v219_v41, %v218_v40  ;;  %v465_v45 = vpack.c.bf16 %v221_v44, %v220_v43  ;;  %v222_v46 = vld [vmem:[%s652_s5 + $0x60] sm:$0xff]  ;;  %v223_v47 = vld [vmem:[%s652_s5 + $0x68] sm:$0xff]  ;;  %v224_v54 = vld [vmem:[%s652_s5 + $0x70] sm:$0xff] }
   0xc   :  { %v468_v48 = vpack.c.bf16 %v223_v47, %v222_v46  ;;  %v309_v49 = vld [vmem:[%s653_s2] ss:$0 sm:$0xff]  ;;  %v225_v55 = vld [vmem:[%s652_s5 + $0x78] sm:$0xff] }
   0xd   :  { %v471_v56 = vpack.c.bf16 %v225_v55, %v224_v54  ;;  %v312_v58 = vld [vmem:[%s655_s4] ss:$0 sm:$0xff] }
   0xe   :  { %433 = vmatpush3.bf16.msra.mxu1 %v432_v12  ;;  %454 = vmatpush3.bf16.msra.mxu0 %v453_v33  ;;  %v313_v63 = vld [vmem:[#allocation2] ss:$0 sm:$0xff] }
   0xf   :  { %434 = vmatprep.subr.bf16.mxu1 %v478_v4  ;;  %455 = vmatprep.subr.bf16.mxu0 %v478_v4 }
  0x12   :  { %436 = vmatpush3.bf16.msra.mxu1 %v435_v15  ;;  %457 = vmatpush3.bf16.msra.mxu0 %v456_v36 }
  0x13   :  { %437 = vmatprep.subr.bf16.mxu1 %v478_v4  ;;  %458 = vmatprep.subr.bf16.mxu0 %v478_v4 }
  0x16   :  { %439 = vmatpush3.bf16.msra.mxu1 %v438_v18  ;;  %460 = vmatpush3.bf16.msra.mxu0 %v459_v39 }
  0x17   :  { %440 = vmatprep.subr.bf16.mxu1 %v478_v4  ;;  %461 = vmatprep.subr.bf16.mxu0 %v478_v4 }
  0x1a   :  { %442 = vmatpush3.bf16.msra.mxu1 %v441_v21  ;;  %463 = vmatpush3.bf16.msra.mxu0 %v462_v42 }
  0x1b   :  { %443 = vmatprep.subr.bf16.mxu1 %v478_v4  ;;  %464 = vmatprep.subr.bf16.mxu0 %v478_v4 }
  0x1e   :  { %445 = vmatpush3.bf16.msra.mxu1 %v444_v24  ;;  %466 = vmatpush3.bf16.msra.mxu0 %v465_v45 }
  0x1f   :  { %446 = vmatprep.subr.bf16.mxu1 %v478_v4  ;;  %467 = vmatprep.subr.bf16.mxu0 %v478_v4 }
  0x22   :  { %448 = vmatpush3.bf16.msra.mxu1 %v447_v27  ;;  %469 = vmatpush3.bf16.msra.mxu0 %v468_v48 }
  0x23   :  { %470 = vmatprep.subr.bf16.mxu0 %v478_v4 }
  0x26   :  { %472 = vmatpush3.bf16.msra.mxu0 %v471_v56 }
  0xd6   :  { %v111_v50 = vpop.f32.mrb[0].mxu0 }
  0xd7   :  { %v112_v51 = vadd.f32 %v309_v49, %v111_v50  ;;  %v354_v52 = vpop.f32.mrb[1].mxu0 }
  0xd9   :  { %v115_v53 = vmax.f32 %v112_v51, 0.0 }
  0xdb   :  { %388 = vmatmul.mubr.f32.vlgmr.msra.gmra.mrb[0].mxu1 %v115_v53 }
 0x1ae   :  { %v205_v59 = vpop.f32.mrb[0].mxu1 }
 0x1af   :  { %v206_v60 = vadd.f32 %v312_v58, %v205_v59  ;;  %v389_v61 = vpop.f32.mrb[1].mxu1 }
 0x1b1   :  { %v209_v62 = vmax.f32 %v206_v60, 0.0 }
 0x1b3   :  { %423 = vmatmul.mubr.f32.vlgmr.msra.gmra.mrb[2].mxu0 %v209_v62 }
 0x286   :  { %v299_v0 = vpop.f32.mrb[2].mxu0 }
 0x287   :  { %v300_v1 = vadd.f32 %v313_v63, %v299_v0  ;;  %v424_v2 = vpop.f32.mrb[3].mxu0 }
 0x289   :  { %304 = vst.msk [vmem:[%s656_s7] sm:$0x3] %vm303_vm3, %v300_v1 }

</bundles_post_ra>
